<compile_context>
chip_gen: v7x
topology: tpu7x:2x2x1
jax: 0.10.0
libtpu: 0.0.40
codegen_flags: <defaults>
</compile_context>

<pallas_src>
import jax
import jax.numpy as jnp
from jax.experimental import pallas as pl
from jax.experimental.pallas import tpu as pltpu


def _round_up(x, m):
    return ((x + m - 1) // m) * m


def _sublane(dtype):
    itemsize = jnp.dtype(dtype).itemsize
    if itemsize >= 4:
        return 8
    if itemsize == 2:
        return 16
    return 32


def _linear_kernel(x_ref, w_ref, b_ref, o_ref):
    # out_tile = x_tile @ W_pad + b_pad     (lane-dense n_pad output)
    o_ref[...] = (
        jnp.dot(x_ref[...], w_ref[...], preferred_element_type=jnp.float32)
        + b_ref[...]
    ).astype(o_ref.dtype)


def _resident_spec(block_shape):
    # Constant block index -> never re-fetched; a second pipeline buffer is
    # dead weight, so request single buffering (fall back gracefully if the
    # installed JAX doesn't accept pipeline_mode).
    try:
        return pl.BlockSpec(block_shape, lambda i: (0, 0),
                            pipeline_mode=pl.Buffered(1))
    except TypeError:
        return pl.BlockSpec(block_shape, lambda i: (0, 0))


def _choose_tile_m(batch, input_dim, n_pad, dtype, max_tile_m):
    """Pick the batch tile: as large as possible (HBM-bound kernel), but
    budgeted against VMEM and split >=2 ways when batch allows (v7x megacore)."""
    sub = _sublane(dtype)
    itemsize = jnp.dtype(dtype).itemsize
    tile_m = min(max_tile_m, _round_up(batch, sub))

    # Ensure the parallel batch axis has at least 2 grid steps when batch is
    # big enough (so both v7x TensorCores get work).
    if batch >= 2 * sub and pl.cdiv(batch, tile_m) < 2:
        tile_m = max(sub, _round_up(pl.cdiv(batch, 2), sub))

    def vmem_bytes(t):
        return (2 * t * input_dim * itemsize      # x tile, double-buffered
                + 2 * t * n_pad * itemsize        # out tile, double-buffered
                + input_dim * n_pad * itemsize    # W_pad, single-buffered
                + n_pad * itemsize)               # b_pad, single-buffered

    budget = 24 << 20  # fits v7x (64 MiB phys) and the 32 MiB scoped limit
    while vmem_bytes(tile_m) > budget and tile_m > sub:
        tile_m = max(sub, _round_up(tile_m // 2, sub))
    return tile_m


def linear_forward_padded(x, w_pad, b_pad, *, max_tile_m=512):
    """out_pad = x @ w_pad + b_pad, lane-dense (batch, n_pad)."""
    batch, input_dim = x.shape
    n_pad = w_pad.shape[1]
    itemsize = jnp.dtype(x.dtype).itemsize

    tile_m = _choose_tile_m(batch, input_dim, n_pad, x.dtype, max_tile_m)
    grid_m = pl.cdiv(batch, tile_m)

    in_specs = [
        pl.BlockSpec((tile_m, input_dim), lambda i: (i, 0)),  # x: tiled over batch
        _resident_spec((input_dim, n_pad)),                   # W_pad: resident
        _resident_spec((1, n_pad)),                           # b_pad: resident
    ]
    out_spec = pl.BlockSpec((tile_m, n_pad), lambda i: (i, 0))

    cost = pl.CostEstimate(
        flops=2 * batch * input_dim * n_pad,
        transcendentals=0,
        bytes_accessed=itemsize * (batch * input_dim + input_dim * n_pad
                                   + n_pad + batch * n_pad),
    )
    return pl.pallas_call(
        _linear_kernel,
        out_shape=jax.ShapeDtypeStruct((batch, n_pad), x.dtype),
        grid=(grid_m,),
        in_specs=in_specs,
        out_specs=out_spec,
        compiler_params=pltpu.CompilerParams(
            dimension_semantics=("parallel",),
            vmem_limit_bytes=32 << 20,   # v5e scoped default is only 16 MiB
        ),
        cost_estimate=cost,
    )(x, w_pad, b_pad)


class SingleGaussianDecoderStdParameterPallas:
    """JAX/Pallas port of the PyTorch SingleGaussianDecoderStdParameter."""

    def __init__(self, input_dim, output_dim, log_std_init=0.0, key=None):
        if key is None:
            key = jax.random.PRNGKey(0)
        kw, kb = jax.random.split(key)
        bound = 1.0 / (input_dim ** 0.5)
        self.input_dim = input_dim
        self.output_dim = output_dim

        # Canonical (PyTorch-layout) parameters, used for the reference check.
        self.weight = jax.random.uniform(
            kw, (output_dim, input_dim), jnp.float32, -bound, bound)
        self.bias = jax.random.uniform(
            kb, (output_dim,), jnp.float32, -bound, bound)
        self.log_std = jnp.ones((output_dim,), jnp.float32) * log_std_init

        # Pre-transposed + lane-padded parameters, built ONCE at init so the
        # kernel output is (sublane,128)-aligned and no per-call transpose /
        # masked store is needed.
        # TODO(synk): optionally store w_pad in bf16 (keep f32 MXU accumulation)
        # to halve weight/activation HBM bytes on v6e/v7x; gated off for exact
        # parity with the f32 PyTorch reference.
        n_pad = _round_up(max(output_dim, 1), 128)
        self.n_pad = n_pad
        self.w_pad = jnp.zeros((input_dim, n_pad), jnp.float32).at[
            :, :output_dim].set(self.weight.T)
        self.b_pad = jnp.zeros((1, n_pad), jnp.float32).at[
            :, :output_dim].set(self.bias)

    def forward(self, x):
        out_pad = linear_forward_padded(x, self.w_pad, self.b_pad)
        # NOTE: if the consumer is jitted, keep the padded slab and fuse this
        # slice downstream instead of materializing it here.
        return out_pad[:, : self.output_dim]

    def get_mean_std(self, x):
        # std = exp(log_std) is batch-independent: computed once here and
        # broadcast lazily -- NOT written back from the kernel (saves a full
        # batch x n_pad HBM writeback vs. the old fused kernel).
        mean = self.forward(x)
        std = jnp.broadcast_to(jnp.exp(self.log_std), mean.shape)
        return mean, std

    def compute_loss(self, features, red_locs):
        # Plain JAX (not a hot-path kernel): Normal log-prob + mean reduction.
        mean, std = self.get_mean_std(features)
        logprob = (-0.5 * jnp.square((red_locs - mean) / std)
                   - jnp.log(std) - 0.5 * jnp.log(2.0 * jnp.pi))
        return -logprob.mean()


if __name__ == "__main__":
    key = jax.random.PRNGKey(0)
    k_param, k_x, k_x2, k_loc = jax.random.split(key, 4)

    batch, input_dim, output_dim = 8, 32, 2
    module = SingleGaussianDecoderStdParameterPallas(
        input_dim, output_dim, log_std_init=0.0, key=k_param)

    x = jax.random.normal(k_x, (batch, input_dim), jnp.float32)

    # forward()
    out = jax.block_until_ready(module.forward(x))
    ref = x @ module.weight.T + module.bias
    assert out.shape == (batch, output_dim)
    assert jnp.allclose(out, ref, atol=1e-5, rtol=1e-5)

    # get_mean_std()
    mean, std = module.get_mean_std(x)
    mean = jax.block_until_ready(mean)
    std = jax.block_until_ready(std)
    assert jnp.allclose(mean, ref, atol=1e-5, rtol=1e-5)
    assert jnp.allclose(std, jnp.ones_like(ref) * jnp.exp(module.log_std),
                        atol=1e-6, rtol=1e-6)

    # compute_loss() (plain JAX around the kernel)
    locs = jax.random.normal(k_loc, (batch, output_dim), jnp.float32)
    loss = jax.block_until_ready(module.compute_loss(x, locs))
    assert jnp.isfinite(loss)

    # Exercise the multi-tile (grid_m >= 2) path with a slightly larger batch.
    x2 = jax.random.normal(k_x2, (48, input_dim), jnp.float32)
    out2 = jax.block_until_ready(module.forward(x2))
    ref2 = x2 @ module.weight.T + module.bias
    assert jnp.allclose(out2, ref2, atol=1e-5, rtol=1e-5)

    print("KERNEL_OK")
</pallas_src>

<mosaic_0001>
module attributes {stable_mosaic.version = 11 : i64} {
  func.func @_linear_kernel(%arg0: i32, %arg1: memref<8x32xf32, #tpu.memory_space<vmem>>, %arg2: memref<32x128xf32, #tpu.memory_space<vmem>>, %arg3: memref<1x128xf32, #tpu.memory_space<vmem>>, %arg4: memref<8x128xf32, #tpu.memory_space<vmem>>) attributes {dimension_semantics = [#tpu.dimension_semantics<parallel>], iteration_bounds = array<i64: 1>, scalar_prefetch = 0 : i64, scratch_operands = 0 : i64, tpu.core_type = #tpu.core_type<tc>, window_params = [{transform_indices = @transform_0, window_bounds = array<i64: 8, 32>}, {pipeline_mode = #tpu.pipeline_mode<synchronous>, transform_indices = @transform_1, window_bounds = array<i64: 32, 128>}, {pipeline_mode = #tpu.pipeline_mode<synchronous>, transform_indices = @transform_2, window_bounds = array<i64: 1, 128>}, {transform_indices = @transform_3, window_bounds = array<i64: 8, 128>}]} {
    %c0 = arith.constant 0 : index
    %c0_0 = arith.constant 0 : index
    %0 = vector.load %arg1[%c0, %c0_0] : memref<8x32xf32, #tpu.memory_space<vmem>>, vector<8x32xf32>
    %c0_1 = arith.constant 0 : index
    %c0_2 = arith.constant 0 : index
    %1 = vector.load %arg2[%c0_1, %c0_2] : memref<32x128xf32, #tpu.memory_space<vmem>>, vector<32x128xf32>
    %cst = arith.constant dense<0.000000e+00> : vector<8x128xf32>
    %2 = tpu.matmul %0, %1, %cst {dimension_numbers = #tpu.dot_dimension_numbers<[1], [0], [0], [1], [0, 0, 1, 1], [], []>} : vector<8x32xf32>, vector<32x128xf32>, vector<8x128xf32> -> vector<8x128xf32>
    %c0_3 = arith.constant 0 : index
    %c0_4 = arith.constant 0 : index
    %3 = vector.load %arg3[%c0_3, %c0_4] : memref<1x128xf32, #tpu.memory_space<vmem>>, vector<1x128xf32>
    %4 = vector.broadcast %3 : vector<1x128xf32> to vector<8x128xf32>
    %5 = arith.addf %2, %4 : vector<8x128xf32>
    %c0_5 = arith.constant 0 : index
    %c0_6 = arith.constant 0 : index
    %6 = vector.load %arg4[%c0_5, %c0_6] : memref<8x128xf32, #tpu.memory_space<vmem>>, vector<8x128xf32>
    tpu.vector_store %arg4[%c0_5, %c0_6], %5 {strides = array<i32>} : memref<8x128xf32, #tpu.memory_space<vmem>>, vector<8x128xf32>,
    return
  }
  func.func @transform_0(%arg0: i32) -> (i32, i32) {
    %c0_i32 = arith.constant 0 : i32
    %c0_i32_0 = arith.constant 0 : i32
    return %arg0, %c0_i32 : i32, i32
  }
  func.func @transform_1(%arg0: i32) -> (i32, i32) {
    %c0_i32 = arith.constant 0 : i32
    %c0_i32_0 = arith.constant 0 : i32
    %c0_i32_1 = arith.constant 0 : i32
    return %c0_i32, %c0_i32_0 : i32, i32
  }
  func.func @transform_2(%arg0: i32) -> (i32, i32) {
    %c0_i32 = arith.constant 0 : i32
    %c0_i32_0 = arith.constant 0 : i32
    %c0_i32_1 = arith.constant 0 : i32
    return %c0_i32, %c0_i32_0 : i32, i32
  }
  func.func @transform_3(%arg0: i32) -> (i32, i32) {
    %c0_i32 = arith.constant 0 : i32
    %c0_i32_0 = arith.constant 0 : i32
    return %arg0, %c0_i32 : i32, i32
  }
}

</mosaic_0001>

<bundles_post_ra>
// kernel: tpu_custom_call.1
= control target key start
LH: loop header
LB: loop body
LE: loop exit
PB: predicated region body
PF: predicated region fallthrough
CT: control target
= control target key end

     0   :  { %8 = vsyncpa [#allocation3], 0  ;;  %s322_s0 = inlined_call_operand.hbm [shape: f32[8,32], index: 0, kind: input, shape index: {}]   ;;  %s323_s1 = inlined_call_operand.hbm [shape: f32[32,128], index: 1, kind: input, shape index: {}]   ;;  %s324_s2 = inlined_call_operand.vmem [shape: f32[1,128], index: 2, kind: input, shape index: {}]   ;;  %s325_s3 = inlined_call_operand.hbm [shape: f32[8,128], index: 3, kind: output, shape index: {}]  }
   0x1   :  { %9 = vsyncpa [#allocation6], 0 }
   0x2   :  { %10 = vsyncpa [#allocation4], 0  ;;  %s248_s12 = smov [#allocation2]   ;;  %s249_s14 = smov [#allocation5]  }
   0x3   :  { %s17_s13 = sshll.u32 %s248_s12, 4  ;;  %s26_s15 = sshll.u32 %s249_s14, 4  ;;  %s18_s13 = int_to_ptr.vmem [resolvable:$true] %s17_s13  ;;  %s276_s15 = int_to_ptr.vmem [resolvable:$true] %s26_s15 }
   0x4   :  { %s176_s18 = scalar_lea.hbm %s322_s0, 128 }
   0x5   :  { %p177_p0 = scmp.ne.s32.totalorder %s322_s0, %s176_s18  ;;  %p180_p1 = scmp.lt.u32.totalorder %s176_s18, %s322_s0 }
   0x7   :  { %p182_p2 = pnand %p180_p1, %p177_p0 }
   0x9   :  { %185 = shalt.err (!%p182_p2)
}
   0xa   :  { %s186_s23 = scalar_lea.vmem %s18_s13, 128  ;;  %p191_p4 = scmp.lt.s32.totalorder %s18_s13, %s18_s13 }
   0xb   :  { %p187_p3 = scmp.ne.s32.totalorder %s18_s13, %s186_s23  ;;  %p192_p5 = scmp.lt.s32.totalorder %s186_s23, %s186_s23 }
   0xd   :  { %p193_p6 = por %p192_p5, %p191_p4 }
   0xf   :  { %p194_p7 = pnand %p193_p6, %p187_p3 }
  0x11   :  { %197 = shalt.err (!%p194_p7)
}
  0x12   :  { %20 = dma.hbm_to_vmem [thread:$0]  %s322_s0, 128, %s18_s13, [#allocation3]  }
  0x13   :  { %s198_s28 = scalar_lea.hbm %s323_s1, 512 }
  0x14   :  { %p199_p8 = scmp.ne.s32.totalorder %s323_s1, %s198_s28  ;;  %p202_p9 = scmp.lt.u32.totalorder %s198_s28, %s323_s1 }
  0x16   :  { %p204_p10 = pnand %p202_p9, %p199_p8 }
  0x18   :  { %207 = shalt.err (!%p204_p10)
}
  0x19   :  { %s208_s6 = scalar_lea.vmem %s276_s15, 512  ;;  %p213_p12 = scmp.lt.s32.totalorder %s276_s15, %s276_s15 }
  0x1a   :  { %p209_p11 = scmp.ne.s32.totalorder %s276_s15, %s208_s6  ;;  %p214_p13 = scmp.lt.s32.totalorder %s208_s6, %s208_s6 }
  0x1c   :  { %p215_p0 = por %p214_p13, %p213_p12 }
  0x1e   :  { %p216_p1 = pnand %p215_p0, %p209_p11 }
  0x20   :  { %219 = shalt.err (!%p216_p1)
}
  0x21   :  { %s250_s0 = smov 128   ;;  %s251_s7 = smov 8  }
  0x22   :  { %32 = dma.hbm_to_vmem [thread:$0]  %s323_s1, 512, %s276_s15, [#allocation6], %s250_s0, %s250_s0, %s251_s7  }
  0x23   :  { %242 = dma.done.wait [#allocation3], 128  }
  0x24   :  { %243 = vsyncadd [#allocation3], 4294967168 }
  0x25   :  { %244 = dma.done.wait [#allocation6], 512  }
  0x26   :  { %245 = vsyncadd [#allocation6], 4294966784  ;;  %v252_v0 = vmov 0.0|0.0   ;;  %vm253_vm0 = vmmov 0   ;;  %v254_v1 = vmov 0.0   ;;  %v42_v2 = vld [vmem:[#allocation5] sm:$0xff] }
  0x27   :  { %162 = vmatprep.subr.bf16.mxu0 %v252_v0  ;;  %159 = vmatprep.mubr.msk.f32.mxu0 %vm253_vm0, %v254_v1  ;;  %v43_v3 = vld [vmem:[#allocation5 + $0x8] sm:$0xff]  ;;  %v44_v4 = vld [vmem:[#allocation5 + $0x10] sm:$0xff]  ;;  %v45_v6 = vld [vmem:[#allocation5 + $0x18] sm:$0xff]  ;;  %vm53_vm1 = vcmask 261120   ;;  %s255_s11 = smov [#allocation7]  }
  0x28   :  { %v163_v5 = vpack.c.bf16 %v43_v3, %v42_v2  ;;  %v166_v7 = vpack.c.bf16 %v45_v6, %v44_v4  ;;  %v41_v8 = vld [vmem:[#allocation2] sm:$0xff]  ;;  %s134_s12 = sshll.u32 %s255_s11, 4  ;;  %s135_s12 = int_to_ptr.vmem [resolvable:$true] %s134_s12 }
  0x29   :  { %v144_v9 = vld [vmem:[%s324_s2] ss:$0 sm:$0xff]  ;;  %s220_s13 = scalar_lea.vmem %s135_s12, 128  ;;  %p225_p3 = scmp.lt.s32.totalorder %s135_s12, %s135_s12 }
  0x2a   :  { %164 = vmatpush3.bf16.msra.mxu0 %v163_v5  ;;  %p221_p2 = scmp.ne.s32.totalorder %s135_s12, %s220_s13  ;;  %p226_p4 = scmp.lt.s32.totalorder %s220_s13, %s220_s13 }
  0x2b   :  { %165 = vmatprep.subr.bf16.mxu0 %v252_v0 }
  0x2c   :  { %p227_p5 = por %p226_p4, %p225_p3 }
  0x2e   :  { %167 = vmatpush3.bf16.msra.mxu0 %v166_v7  ;;  %p228_p6 = pnand %p227_p5, %p221_p2 }
  0x31   :  { %160 = vmatmul.mubr.msk.f32.vlgmr.msra.gmra.mrb[0].mxu0 %vm53_vm1, %v41_v8 }
 0x104   :  { %v123_v10 = vpop.f32.mrb[0].mxu0 }
 0x105   :  { %v124_v11 = vadd.f32 %v144_v9, %v123_v10  ;;  %v161_v12 = vpop.f32.mrb[1].mxu0 }
 0x107   :  { %127 = vst [vmem:[#allocation7] sm:$0xff] %v124_v11 }
 0x108   :  { %231 = shalt.err (!%p228_p6)
}
 0x109   :  { %s232_s16 = scalar_lea.hbm %s325_s3, 128 }
 0x10a   :  { %p233_p7 = scmp.ne.s32.totalorder %s325_s3, %s232_s16  ;;  %p236_p8 = scmp.lt.u32.totalorder %s232_s16, %s325_s3 }
 0x10c   :  { %p238_p9 = pnand %p236_p8, %p233_p7 }
 0x10e   :  { %241 = shalt.err (!%p238_p9)
}
 0x10f   :  { %137 = dma.vmem_to_hbm [thread:$0]  %s135_s12, 128, %s325_s3, [#allocation4]  }
 0x110   :  { %246 = dma.done.wait [#allocation4], 128  }
 0x111   :  { %247 = vsyncadd [#allocation4], 4294967168 }
 0x112   :  { %141 = vsyncpa [#allocation3], 1 }
 0x113   :  { %142 = vsyncpa [#allocation6], 1 }
 0x114   :  { %143 = vsyncpa [#allocation4], 1 }

</bundles_post_ra>
